<compile_context>
chip_gen: v5e
topology: v5e:2x2
jax: 0.10.0
libtpu: 0.0.40
codegen_flags: <defaults>
</compile_context>

<pallas_src>
import functools

import jax
import jax.numpy as jnp
from jax import lax
from jax.experimental import pallas as pl
from jax.experimental.pallas import tpu as pltpu

EPS = 1e-5          # nn.BatchNorm1d default eps
LANE = 128          # TPU lane width
TARGET_ROWS = 512   # MXU M-dim / DMA block-height target per grid step
                    # TODO(synk): drop to ~256 on v5e (16 MiB scoped VMEM, 1 vst slot)


# ---------------------------------------------------------------------------
# Kernel: one batch tile (B_TILE samples stacked along rows) per grid step,
# whole residual block fused.
# ---------------------------------------------------------------------------
def residual_block_kernel(x_ref, w1_ref, b1_ref, w2_ref, b2_ref,
                          ws_ref, bs_ref, out_ref, *, seq_len):
    """
    x_ref  : (M, Cinp)        bf16  M = B_TILE * L, samples stacked along rows
    w1_ref : (3*Cinp, Coutp)  bf16  conv1 taps stacked along rows, BN1 folded in
    b1_ref : (1, Coutp)       f32   conv1 bias * s1 + t1
    w2_ref : (3*Coutp, Coutp) bf16  conv2 taps stacked, BN2 folded in
    b2_ref : (1, Coutp)       f32
    ws_ref : (Cinp, Coutp)    bf16  1x1 shortcut conv, BNs folded in
    bs_ref : (1, Coutp)       f32
    out_ref: (M, Coutp)       bf16
    """
    M, cinp = x_ref.shape
    coutp = out_ref.shape[-1]

    def local_rows(width):
        # per-sample row index (0..L-1) for every row of the stacked slab
        row = lax.broadcasted_iota(jnp.int32, (M, width), 0)
        if (seq_len & (seq_len - 1)) == 0:        # power-of-two L: bitwise AND
            return row & (seq_len - 1)
        return lax.rem(row, seq_len)

    # Hoisted boundary-row index masks, shared between conv1/conv2 when widths match.
    loc_in = local_rows(cinp)
    loc_h = loc_in if coutp == cinp else local_rows(coutp)

    def conv3(src_bf, src_f32, wcol_ref, loc):
        # Conv1d(kernel_size=3, stride=1, padding=1) as ONE im2col matmul.
        # The +/-1 taps come from pltpu.roll (XLU sublane rotation); rows that
        # would wrap across a sample boundary (loc == 0 / == L-1) are masked to
        # zero, which is exactly zero padding along L.  Taps are cast to bf16
        # as they are built, so only the bf16 (M, 3C) im2col slab materializes
        # (no f32 copy of it).
        prev = jnp.where(loc == 0, 0.0,
                         pltpu.roll(src_f32, shift=1, axis=0)
                         ).astype(jnp.bfloat16)                    # src[l-1]
        nxt = jnp.where(loc == seq_len - 1, 0.0,
                        pltpu.roll(src_f32, shift=M - 1, axis=0)
                        ).astype(jnp.bfloat16)                     # src[l+1]
        xcol = jnp.concatenate([prev, src_bf, nxt], axis=-1)       # (M, 3C) bf16
        return jnp.dot(xcol, wcol_ref[...], preferred_element_type=jnp.float32)

    x_bf = x_ref[...]                          # (M, Cinp) bf16
    x_f32 = x_bf.astype(jnp.float32)

    # conv1 (+bn1 folded) -> relu
    h = jnp.maximum(conv3(x_bf, x_f32, w1_ref, loc_in) + b1_ref[...], 0.0)

    # conv2 (+bn2 folded); Dropout(p=0.5) is identity in eval mode.
    # TODO(synk): training-mode dropout mask and batch-statistic BN not implemented.
    o = conv3(h.astype(jnp.bfloat16), h, w2_ref, loc_h) + b2_ref[...]

    # shortcut: 1x1 conv (+bn folded) on the original input
    res = jnp.dot(x_bf, ws_ref[...],
                  preferred_element_type=jnp.float32) + bs_ref[...]

    # residual add -> relu; f32 epilogue, bf16 store (halves HBM writeback)
    out_ref[...] = jnp.maximum(o + res, 0.0).astype(out_ref.dtype)


# ---------------------------------------------------------------------------
# Wrapper: layout transposes, lane padding, batch-tiled pallas_call.
# ---------------------------------------------------------------------------
@functools.partial(jax.jit, static_argnums=(1,))
def residual_block_forward(x_ncl, cout, w1c, b1f, w2c, b2f, wsc, bsf):
    N, cin, L = x_ncl.shape
    cinp = w1c.shape[0] // 3
    coutp = w1c.shape[1]

    # NCL -> NLC so channels sit on the lane (minor) axis; lane-pad channels,
    # cast to bf16 (halves HBM traffic / VMEM residency of x).
    # TODO(synk): fold this transpose/pad into the kernel (read (Cin, L) blocks
    # and transpose in-kernel) to remove an HBM round trip.  This layout
    # targets C >= 128; for tiny channel counts a channels-on-sublanes variant
    # would avoid padding Cin/Cout up to 128.
    x = jnp.transpose(x_ncl, (0, 2, 1))
    x = jnp.pad(x, ((0, 0), (0, 0), (0, cinp - cin))).astype(jnp.bfloat16)

    # Batch tile: several samples per grid step -> MXU M dim = b_tile*L, grid
    # overhead amortized, per-step VMEM bounded (v7x: 64 MiB physical VMEM).
    # TODO(synk): for very long L add a second grid axis over L with halo'd
    # tiles (manual make_async_copy) instead of full-L slabs.
    if L % 16 == 0:                       # keep block sublane dim 16-aligned (bf16)
        b_tile = max(1, min(N, TARGET_ROWS // L))
    else:
        b_tile = N                        # single block == full array dims (exempt)
    n_pad = ((N + b_tile - 1) // b_tile) * b_tile
    if n_pad != N:
        x = jnp.pad(x, ((0, n_pad - N), (0, 0), (0, 0)))
    rows = b_tile * L
    x2 = x.reshape(n_pad * L, cinp)       # free reshape: samples stacked on rows

    wconst = lambda i: (0, 0)             # weights/biases resident across the grid
    out2 = pl.pallas_call(
        functools.partial(residual_block_kernel, seq_len=L),
        grid=(n_pad // b_tile,),
        in_specs=[
            pl.BlockSpec((rows, cinp), lambda i: (i, 0)),
            # grid-invariant weights/biases: single-buffer to halve their VMEM
            # footprint (important under v7x's 64 MiB / v5e's 16 MiB defaults).
            pl.BlockSpec((3 * cinp, coutp), wconst, pipeline_mode=pl.Buffered(1)),
            pl.BlockSpec((1, coutp), wconst, pipeline_mode=pl.Buffered(1)),
            pl.BlockSpec((3 * coutp, coutp), wconst, pipeline_mode=pl.Buffered(1)),
            pl.BlockSpec((1, coutp), wconst, pipeline_mode=pl.Buffered(1)),
            pl.BlockSpec((cinp, coutp), wconst, pipeline_mode=pl.Buffered(1)),
            pl.BlockSpec((1, coutp), wconst, pipeline_mode=pl.Buffered(1)),
        ],
        out_specs=pl.BlockSpec((rows, coutp), lambda i: (i, 0)),
        out_shape=jax.ShapeDtypeStruct((n_pad * L, coutp), jnp.bfloat16),
        compiler_params=pltpu.CompilerParams(
            dimension_semantics=("parallel",),          # megacore sharding
            vmem_limit_bytes=48 * 1024 * 1024),
    )(x2, w1c, b1f, w2c, b2f, wsc, bsf)

    # back to PyTorch (N, C_out, L) in f32, dropping lane/batch padding
    out = out2.reshape(n_pad, L, coutp)[:N, :, :cout].astype(jnp.float32)
    return jnp.transpose(out, (0, 2, 1))


# ---------------------------------------------------------------------------
# Deterministic synthetic parameters (PyTorch layouts), BN folding, reference.
# ---------------------------------------------------------------------------
def init_params(key, cin, cout):
    keys = jax.random.split(key, 9)

    def bn_params(k):
        k1, k2, k3, k4 = jax.random.split(k, 4)
        g = jax.random.uniform(k1, (cout,), minval=0.75, maxval=1.25)
        b = 0.1 * jax.random.normal(k2, (cout,))
        rm = 0.1 * jax.random.normal(k3, (cout,))
        rv = jax.random.uniform(k4, (cout,), minval=0.75, maxval=1.25)
        return g, b, rm, rv

    return dict(
        w1=0.2 * jax.random.normal(keys[0], (cout, cin, 3)),   # Conv1d weight (O, I, K)
        b1=0.1 * jax.random.normal(keys[1], (cout,)),
        bn1=bn_params(keys[2]),
        w2=0.2 * jax.random.normal(keys[3], (cout, cout, 3)),
        b2=0.1 * jax.random.normal(keys[4], (cout,)),
        bn2=bn_params(keys[5]),
        ws=0.2 * jax.random.normal(keys[6], (cout, cin, 1)),   # 1x1 shortcut conv
        bs=0.1 * jax.random.normal(keys[7], (cout,)),
        bns=bn_params(keys[8]),
    )


def _bn_fold(g, b, rm, rv):
    s = g / jnp.sqrt(rv + EPS)
    return s, b - rm * s


def _pad2(a, rows, cols):
    return jnp.pad(a, ((0, rows - a.shape[0]), (0, cols - a.shape[1])))


def kernel_args(p, cin, cout, cinp, coutp):
    """Fold BN into conv weights/biases, lane-pad channels, stack the 3 taps."""

    def fold_k3(w_oik, bias, bn, cin_padded):
        s, t = _bn_fold(*bn)                                        # (cout,)
        taps = [jnp.transpose(w_oik[:, :, k], (1, 0)) * s[None, :]  # (I, O) * s
                for k in range(3)]
        wcol = jnp.concatenate(
            [_pad2(tk, cin_padded, coutp) for tk in taps], axis=0)  # (3*Ip, Op)
        bvec = jnp.pad(bias * s + t, (0, coutp - cout)).reshape(1, coutp)
        return wcol.astype(jnp.bfloat16), bvec.astype(jnp.float32)

    w1c, b1f = fold_k3(p['w1'], p['b1'], p['bn1'], cinp)
    w2c, b2f = fold_k3(p['w2'], p['b2'], p['bn2'], coutp)

    ss, ts = _bn_fold(*p['bns'])
    wsc = _pad2(jnp.transpose(p['ws'][:, :, 0], (1, 0)) * ss[None, :],
                cinp, coutp).astype(jnp.bfloat16)
    bsf = jnp.pad(p['bs'] * ss + ts,
                  (0, coutp - cout)).reshape(1, coutp).astype(jnp.float32)
    return (w1c, b1f, w2c, b2f, wsc, bsf)


def reference_forward(x_ncl, p):
    """Pure-JAX reference mirroring PyTorch eval-mode semantics (NCL layout, f32)."""
    def conv1d(x, w, b, pad):
        y = lax.conv_general_dilated(x, w, window_strides=(1,),
                                     padding=[(pad, pad)],
                                     dimension_numbers=('NCH', 'OIH', 'NCH'))
        return y + b[None, :, None]

    def bn(x, bnp):
        g, b, rm, rv = bnp
        return ((x - rm[None, :, None]) / jnp.sqrt(rv[None, :, None] + EPS)
                * g[None, :, None] + b[None, :, None])

    residual = bn(conv1d(x_ncl, p['ws'], p['bs'], 0), p['bns'])
    out = jax.nn.relu(bn(conv1d(x_ncl, p['w1'], p['b1'], 1), p['bn1']))
    out = bn(conv1d(out, p['w2'], p['b2'], 1), p['bn2'])
    return jax.nn.relu(out + residual)


def _round_up(n, m):
    return (n + m - 1) // m * m


if __name__ == "__main__":
    key = jax.random.PRNGKey(0)
    kx, kp = jax.random.split(key)

    N, Cin, Cout, L = 4, 4, 8, 16                  # downsample=False, in != out
    Cinp = _round_up(Cin, LANE)
    Coutp = _round_up(Cout, LANE)

    x = jax.random.normal(kx, (N, Cin, L), jnp.float32)
    params = init_params(kp, Cin, Cout)
    kargs = kernel_args(params, Cin, Cout, Cinp, Coutp)

    out = residual_block_forward(x, Cout, *kargs)
    out = jax.block_until_ready(out)

    ref = reference_forward(x, params)
    assert out.shape == (N, Cout, L), out.shape
    # bf16 MXU inputs + bf16 output store -> tolerance loosened from pure-f32 1e-4.
    err = float(jnp.max(jnp.abs(out - ref)))
    assert jnp.allclose(out, ref, atol=7e-2, rtol=5e-2), err
    print("KERNEL_OK")
</pallas_src>

<mosaic_0001>
module attributes {stable_mosaic.version = 11 : i64} {
  func.func @residual_block_kernel(%arg0: i32, %arg1: memref<64x128xbf16, #tpu.memory_space<vmem>>, %arg2: memref<384x128xbf16, #tpu.memory_space<vmem>>, %arg3: memref<1x128xf32, #tpu.memory_space<vmem>>, %arg4: memref<384x128xbf16, #tpu.memory_space<vmem>>, %arg5: memref<1x128xf32, #tpu.memory_space<vmem>>, %arg6: memref<128x128xbf16, #tpu.memory_space<vmem>>, %arg7: memref<1x128xf32, #tpu.memory_space<vmem>>, %arg8: memref<64x128xbf16, #tpu.memory_space<vmem>>) attributes {dimension_semantics = [#tpu.dimension_semantics<parallel>], iteration_bounds = array<i64: 1>, scalar_prefetch = 0 : i64, scratch_operands = 0 : i64, tpu.core_type = #tpu.core_type<tc>, window_params = [{transform_indices = @transform_0, window_bounds = array<i64: 64, 128>}, {pipeline_mode = #tpu.pipeline_mode<synchronous>, transform_indices = @transform_1, window_bounds = array<i64: 384, 128>}, {pipeline_mode = #tpu.pipeline_mode<synchronous>, transform_indices = @transform_2, window_bounds = array<i64: 1, 128>}, {pipeline_mode = #tpu.pipeline_mode<synchronous>, transform_indices = @transform_3, window_bounds = array<i64: 384, 128>}, {pipeline_mode = #tpu.pipeline_mode<synchronous>, transform_indices = @transform_4, window_bounds = array<i64: 1, 128>}, {pipeline_mode = #tpu.pipeline_mode<synchronous>, transform_indices = @transform_5, window_bounds = array<i64: 128, 128>}, {pipeline_mode = #tpu.pipeline_mode<synchronous>, transform_indices = @transform_6, window_bounds = array<i64: 1, 128>}, {transform_indices = @transform_7, window_bounds = array<i64: 64, 128>}]} {
    %0 = tpu.iota {dimensions = array<i32: 0>} : vector<64x128xi32>
    %c15_i32 = arith.constant 15 : i32
    %1 = vector.broadcast %c15_i32 : i32 to vector<64x128xi32>
    %2 = arith.andi %0, %1 : vector<64x128xi32>
    %c0 = arith.constant 0 : index
    %c0_0 = arith.constant 0 : index
    %3 = vector.load %arg1[%c0, %c0_0] : memref<64x128xbf16, #tpu.memory_space<vmem>>, vector<64x128xbf16>
    %4 = arith.extf %3 : vector<64x128xbf16> to vector<64x128xf32>
    %c0_i32 = arith.constant 0 : i32
    %5 = vector.broadcast %c0_i32 : i32 to vector<64x128xi32>
    %6 = arith.cmpi eq, %2, %5 : vector<64x128xi32>
    %c1_i32 = arith.constant 1 : i32
    %7 = tpu.dynamic_rotate %4 by %c1_i32 dim 0 : vector<64x128xf32>, i32 -> vector<64x128xf32>
    %cst = arith.constant 0.000000e+00 : f32
    %8 = vector.broadcast %cst : f32 to vector<64x128xf32>
    %9 = arith.select %6, %8, %7 : vector<64x128xi1>, vector<64x128xf32>
    %10 = arith.truncf %9 : vector<64x128xf32> to vector<64x128xbf16>
    %c15_i32_1 = arith.constant 15 : i32
    %11 = vector.broadcast %c15_i32_1 : i32 to vector<64x128xi32>
    %12 = arith.cmpi eq, %2, %11 : vector<64x128xi32>
    %c63_i32 = arith.constant 63 : i32
    %13 = tpu.dynamic_rotate %4 by %c63_i32 dim 0 : vector<64x128xf32>, i32 -> vector<64x128xf32>
    %cst_2 = arith.constant 0.000000e+00 : f32
    %14 = vector.broadcast %cst_2 : f32 to vector<64x128xf32>
    %15 = arith.select %12, %14, %13 : vector<64x128xi1>, vector<64x128xf32>
    %16 = arith.truncf %15 : vector<64x128xf32> to vector<64x128xbf16>
    %17 = tpu.concatenate %10, %3, %16 in 1 : vector<64x128xbf16>, vector<64x128xbf16>, vector<64x128xbf16> -> vector<64x384xbf16>
    %c0_3 = arith.constant 0 : index
    %c0_4 = arith.constant 0 : index
    %18 = vector.load %arg2[%c0_3, %c0_4] : memref<384x128xbf16, #tpu.memory_space<vmem>>, vector<384x128xbf16>
    %cst_5 = arith.constant dense<0.000000e+00> : vector<64x128xf32>
    %19 = tpu.matmul %17, %18, %cst_5 {dimension_numbers = #tpu.dot_dimension_numbers<[1], [0], [0], [1], [0, 0, 1, 1], [], []>} : vector<64x384xbf16>, vector<384x128xbf16>, vector<64x128xf32> -> vector<64x128xf32>
    %c0_6 = arith.constant 0 : index
    %c0_7 = arith.constant 0 : index
    %20 = vector.load %arg3[%c0_6, %c0_7] : memref<1x128xf32, #tpu.memory_space<vmem>>, vector<1x128xf32>
    %21 = vector.broadcast %20 : vector<1x128xf32> to vector<64x128xf32>
    %22 = arith.addf %19, %21 : vector<64x128xf32>
    %cst_8 = arith.constant 0.000000e+00 : f32
    %23 = vector.broadcast %cst_8 : f32 to vector<64x128xf32>
    %24 = arith.maximumf %22, %23 : vector<64x128xf32>
    %25 = arith.truncf %24 : vector<64x128xf32> to vector<64x128xbf16>
    %c0_i32_9 = arith.constant 0 : i32
    %26 = vector.broadcast %c0_i32_9 : i32 to vector<64x128xi32>
    %27 = arith.cmpi eq, %2, %26 : vector<64x128xi32>
    %c1_i32_10 = arith.constant 1 : i32
    %28 = tpu.dynamic_rotate %24 by %c1_i32_10 dim 0 : vector<64x128xf32>, i32 -> vector<64x128xf32>
    %cst_11 = arith.constant 0.000000e+00 : f32
    %29 = vector.broadcast %cst_11 : f32 to vector<64x128xf32>
    %30 = arith.select %27, %29, %28 : vector<64x128xi1>, vector<64x128xf32>
    %31 = arith.truncf %30 : vector<64x128xf32> to vector<64x128xbf16>
    %c15_i32_12 = arith.constant 15 : i32
    %32 = vector.broadcast %c15_i32_12 : i32 to vector<64x128xi32>
    %33 = arith.cmpi eq, %2, %32 : vector<64x128xi32>
    %c63_i32_13 = arith.constant 63 : i32
    %34 = tpu.dynamic_rotate %24 by %c63_i32_13 dim 0 : vector<64x128xf32>, i32 -> vector<64x128xf32>
    %cst_14 = arith.constant 0.000000e+00 : f32
    %35 = vector.broadcast %cst_14 : f32 to vector<64x128xf32>
    %36 = arith.select %33, %35, %34 : vector<64x128xi1>, vector<64x128xf32>
    %37 = arith.truncf %36 : vector<64x128xf32> to vector<64x128xbf16>
    %38 = tpu.concatenate %31, %25, %37 in 1 : vector<64x128xbf16>, vector<64x128xbf16>, vector<64x128xbf16> -> vector<64x384xbf16>
    %c0_15 = arith.constant 0 : index
    %c0_16 = arith.constant 0 : index
    %39 = vector.load %arg4[%c0_15, %c0_16] : memref<384x128xbf16, #tpu.memory_space<vmem>>, vector<384x128xbf16>
    %cst_17 = arith.constant dense<0.000000e+00> : vector<64x128xf32>
    %40 = tpu.matmul %38, %39, %cst_17 {dimension_numbers = #tpu.dot_dimension_numbers<[1], [0], [0], [1], [0, 0, 1, 1], [], []>} : vector<64x384xbf16>, vector<384x128xbf16>, vector<64x128xf32> -> vector<64x128xf32>
    %c0_18 = arith.constant 0 : index
    %c0_19 = arith.constant 0 : index
    %41 = vector.load %arg5[%c0_18, %c0_19] : memref<1x128xf32, #tpu.memory_space<vmem>>, vector<1x128xf32>
    %42 = vector.broadcast %41 : vector<1x128xf32> to vector<64x128xf32>
    %43 = arith.addf %40, %42 : vector<64x128xf32>
    %c0_20 = arith.constant 0 : index
    %c0_21 = arith.constant 0 : index
    %44 = vector.load %arg6[%c0_20, %c0_21] : memref<128x128xbf16, #tpu.memory_space<vmem>>, vector<128x128xbf16>
    %cst_22 = arith.constant dense<0.000000e+00> : vector<64x128xf32>
    %45 = tpu.matmul %3, %44, %cst_22 {dimension_numbers = #tpu.dot_dimension_numbers<[1], [0], [0], [1], [0, 0, 1, 1], [], []>} : vector<64x128xbf16>, vector<128x128xbf16>, vector<64x128xf32> -> vector<64x128xf32>
    %c0_23 = arith.constant 0 : index
    %c0_24 = arith.constant 0 : index
    %46 = vector.load %arg7[%c0_23, %c0_24] : memref<1x128xf32, #tpu.memory_space<vmem>>, vector<1x128xf32>
    %47 = vector.broadcast %46 : vector<1x128xf32> to vector<64x128xf32>
    %48 = arith.addf %45, %47 : vector<64x128xf32>
    %49 = arith.addf %43, %48 : vector<64x128xf32>
    %cst_25 = arith.constant 0.000000e+00 : f32
    %50 = vector.broadcast %cst_25 : f32 to vector<64x128xf32>
    %51 = arith.maximumf %49, %50 : vector<64x128xf32>
    %52 = arith.truncf %51 : vector<64x128xf32> to vector<64x128xbf16>
    %c0_26 = arith.constant 0 : index
    %c0_27 = arith.constant 0 : index
    %53 = vector.load %arg8[%c0_26, %c0_27] : memref<64x128xbf16, #tpu.memory_space<vmem>>, vector<64x128xbf16>
    tpu.vector_store %arg8[%c0_26, %c0_27], %52 {strides = array<i32>} : memref<64x128xbf16, #tpu.memory_space<vmem>>, vector<64x128xbf16>,
    return
  }
  func.func @transform_0(%arg0: i32) -> (i32, i32) {
    %c0_i32 = arith.constant 0 : i32
    %c0_i32_0 = arith.constant 0 : i32
    return %arg0, %c0_i32 : i32, i32
  }
  func.func @transform_1(%arg0: i32) -> (i32, i32) {
    %c0_i32 = arith.constant 0 : i32
    %c0_i32_0 = arith.constant 0 : i32
    %c0_i32_1 = arith.constant 0 : i32
    return %c0_i32, %c0_i32_0 : i32, i32
  }
  func.func @transform_2(%arg0: i32) -> (i32, i32) {
    %c0_i32 = arith.constant 0 : i32
    %c0_i32_0 = arith.constant 0 : i32
    %c0_i32_1 = arith.constant 0 : i32
    return %c0_i32, %c0_i32_0 : i32, i32
  }
  func.func @transform_3(%arg0: i32) -> (i32, i32) {
    %c0_i32 = arith.constant 0 : i32
    %c0_i32_0 = arith.constant 0 : i32
    %c0_i32_1 = arith.constant 0 : i32
    return %c0_i32, %c0_i32_0 : i32, i32
  }
  func.func @transform_4(%arg0: i32) -> (i32, i32) {
    %c0_i32 = arith.constant 0 : i32
    %c0_i32_0 = arith.constant 0 : i32
    %c0_i32_1 = arith.constant 0 : i32
    return %c0_i32, %c0_i32_0 : i32, i32
  }
  func.func @transform_5(%arg0: i32) -> (i32, i32) {
    %c0_i32 = arith.constant 0 : i32
    %c0_i32_0 = arith.constant 0 : i32
    %c0_i32_1 = arith.constant 0 : i32
    return %c0_i32, %c0_i32_0 : i32, i32
  }
  func.func @transform_6(%arg0: i32) -> (i32, i32) {
    %c0_i32 = arith.constant 0 : i32
    %c0_i32_0 = arith.constant 0 : i32
    %c0_i32_1 = arith.constant 0 : i32
    return %c0_i32, %c0_i32_0 : i32, i32
  }
  func.func @transform_7(%arg0: i32) -> (i32, i32) {
    %c0_i32 = arith.constant 0 : i32
    %c0_i32_0 = arith.constant 0 : i32
    return %arg0, %c0_i32 : i32, i32
  }
}

</mosaic_0001>

<bundles_post_ra>
// kernel: residual_block_forward.1
= control target key start
LH: loop header
LB: loop body
LE: loop exit
PB: predicated region body
PF: predicated region fallthrough
CT: control target
= control target key end

     0   :  { %12 = vsyncpa [#allocation3], 0  ;;  %s1947_s0 = inlined_call_operand.vmem [shape: bf16[64,128], index: 0, kind: input, shape index: {}]   ;;  %s1948_s1 = inlined_call_operand.hbm [shape: bf16[384,128], index: 1, kind: input, shape index: {}]   ;;  %s1949_s2 = inlined_call_operand.vmem [shape: f32[1,128], index: 2, kind: input, shape index: {}]   ;;  %s1950_s3 = inlined_call_operand.hbm [shape: bf16[384,128], index: 3, kind: input, shape index: {}]   ;;  %s1951_s4 = inlined_call_operand.vmem [shape: f32[1,128], index: 4, kind: input, shape index: {}]   ;;  %s1952_s5 = inlined_call_operand.vmem [shape: bf16[128,128], index: 5, kind: input, shape index: {}]   ;;  %s1953_s6 = inlined_call_operand.vmem [shape: f32[1,128], index: 6, kind: input, shape index: {}]   ;;  %s1954_s7 = inlined_call_operand.vmem [shape: bf16[64,128], index: 7, kind: output, shape index: {}]  }
   0x1   :  { %s20_s26 = sshll.u32 %s1948_s1, 4  ;;  %s21_s26 = int_to_ptr.hbm [resolvable:$true] %s20_s26 }
   0x2   :  { %13 = vsyncpa [#allocation5], 0  ;;  %s1504_s27 = smov [#allocation2]   ;;  %s35_s8 = sshll.u32 %s1950_s3, 4  ;;  %s36_s8 = int_to_ptr.hbm [resolvable:$true] %s35_s8 }
   0x3   :  { %s22_s28 = sshll.u32 %s1504_s27, 4  ;;  %s1505_s9 = smov 64   ;;  %s23_s28 = int_to_ptr.vmem [resolvable:$true] %s22_s28 }
   0x4   :  { %s1506_s10 = smov 4   ;;  %s1507_s11 = smov [#allocation4]  }
   0x5   :  { %28 = dma.hbm_to_vmem [thread:$0]  %s21_s26, 3072, %s23_s28, [#allocation3], %s1505_s9, %s1505_s9, %s1506_s10  }
   0x6   :  { %s37_s12 = sshll.u32 %s1507_s11, 4  ;;  %s38_s12 = int_to_ptr.vmem [resolvable:$true] %s37_s12 }
   0x7   :  { %43 = dma.hbm_to_vmem [thread:$0]  %s36_s8, 3072, %s38_s12, [#allocation5], %s1505_s9, %s1505_s9, %s1506_s10  }
   0x8   :  { %1500 = dma.done.wait [#allocation3], 3072  }
   0x9   :  { %1501 = vsyncadd [#allocation3], 4294964224 }
   0xa   :  { %1502 = dma.done.wait [#allocation5], 3072  }
   0xb   :  { %1503 = vsyncadd [#allocation5], 4294964224  ;;  %v1349_v0 = vld [vmem:[#allocation2 + $0x38] sm:$0xff]  ;;  %v58_v3 = vlaneseq  ;;  %v1348_v4 = vld [vmem:[#allocation2 + $0x30] sm:$0xff] }
   0xc   :  { %v1357_v1 = vld [vmem:[#allocation2 + $0x78] sm:$0xff]  ;;  %441 = vmatpush.bf16.msra.mxu0 %v1349_v0  ;;  %v1356_v5 = vld [vmem:[#allocation2 + $0x70] sm:$0xff]  ;;  %1421 = vmatpush.bf16.msra.mxu3 %v1349_v0  ;;  %v1347_v8 = vld [vmem:[#allocation2 + $0x28] sm:$0xff] }
   0xd   :  { %v1365_v2 = vld [vmem:[#allocation2 + $0xb8] sm:$0xff]  ;;  %470 = vmatpush.bf16.msra.mxu1 %v1357_v1  ;;  %v1364_v6 = vld [vmem:[#allocation2 + $0xb0] sm:$0xff]  ;;  %v1554_v7 = vshrl.u32 %v58_v3, 7  ;;  %v1355_v9 = vld [vmem:[#allocation2 + $0x68] sm:$0xff] }
   0xe   :  { %499 = vmatpush.bf16.msra.mxu2 %v1365_v2  ;;  %v1363_v10 = vld [vmem:[#allocation2 + $0xa8] sm:$0xff]  ;;  %v75_v11 = vld [vmem:[%s1947_s0] sm:$0xff]   ;;  %v1562_v12 = vld [vmem:[%s1947_s0 + $0x18] sm:$0xff]  }
   0xf   :  { %v60_v13 = vadd.s32 8, %v1554_v7  ;;  %v1346_v14 = vld [vmem:[#allocation2 + $0x20] sm:$0xff]  ;;  %v83_v15 = vunpack.c.l.bf16 %v75_v11  ;;  %v84_v16 = vunpack.c.h.bf16 %v75_v11  ;;  %v90_v17 = vunpack.c.h.bf16 %v1562_v12  ;;  %v1569_v18 = vld [vmem:[%s1947_s0 + $0x8] sm:$0xff]   ;;  %v1345_v28 = vld [vmem:[#allocation2 + $0x18] sm:$0xff] }
  0x10   :  { %442 = vmatpush.bf16.msra.mxu0 %v1348_v4  ;;  %1422 = vmatpush.bf16.msra.mxu3 %v1348_v4  ;;  %v1354_v19 = vld [vmem:[#allocation2 + $0x60] sm:$0xff]  ;;  %v85_v20 = vunpack.c.l.bf16 %v1569_v18  ;;  %v67_v22 = vand.u32 15, %v1554_v7  ;;  %vm107_vm0 = vcmp.lt.s32.totalorder %v1554_v7, 1  ;;  %vm148_vm1 = vcmp.lt.s32.totalorder %v1554_v7, 7  ;;  %v1353_v29 = vld [vmem:[#allocation2 + $0x58] sm:$0xff]  ;;  %v1605_v38 = vld [vmem:[%s1947_s0 + $0x10] sm:$0xff]  }
  0x11   :  { %471 = vmatpush.bf16.msra.mxu1 %v1356_v5  ;;  %v1362_v21 = vld [vmem:[#allocation2 + $0xa0] sm:$0xff]  ;;  %v99_v23 = vrot.slane %v83_v15, 7  ;;  %v1575_v24 = vrot.slane %v90_v17, 7  ;;  %v68_v25 = vand.u32 15, %v60_v13  ;;  %v141_v26 = vrot.slane %v84_v16, 1  ;;  %v1361_v31 = vld [vmem:[#allocation2 + $0x98] sm:$0xff] }
  0x12   :  { %500 = vmatpush.bf16.msra.mxu2 %v1364_v6  ;;  %v1580_v27 = vrot.slane %v85_v20, 1  ;;  %v1583_v30 = vrot.slane %v84_v16, 7  ;;  %vm1585_vm2 = vcmp.eq.s32.totalorder %v67_v22, 0  ;;  %v1592_v34 = vrot.slane %v83_v15, 1  ;;  %v1344_v39 = vld [vmem:[#allocation2 + $0x10] sm:$0xff]  ;;  %v1343_v55 = vld [vmem:[#allocation2 + $0x8] sm:$0xff] }
  0x13   :  { %v115_v33 = vsel %vm107_vm0, %v1575_v24, %v99_v23  ;;  %vm1594_vm3 = vcmp.eq.s32.totalorder %v68_v25, 15  ;;  %v86_v37 = vunpack.c.h.bf16 %v1569_v18  ;;  %v1352_v40 = vld [vmem:[#allocation2 + $0x50] sm:$0xff]  ;;  %v87_v46 = vunpack.c.l.bf16 %v1605_v38  ;;  %v1351_v56 = vld [vmem:[#allocation2 + $0x48] sm:$0xff]  ;;  %v1358_v15 = vld [vmem:[#allocation2 + $0x80] sm:$0xff] }
  0x14   :  { %443 = vmatpush.bf16.msra.mxu0 %v1347_v8  ;;  %1423 = vmatpush.bf16.msra.mxu3 %v1347_v8  ;;  %v154_v36 = vsel %vm148_vm1, %v141_v26, %v1580_v27  ;;  %v114_v41 = vsel %vm107_vm0, %v99_v23, %v1583_v30  ;;  %v116_v42 = vsel %vm1585_vm2, 0.0, %v115_v33  ;;  %v1360_v43 = vld [vmem:[#allocation2 + $0x90] sm:$0xff]  ;;  %v155_v44 = vsel %vm148_vm1, %v1592_v34, %v141_v26  ;;  %v1359_v60 = vld [vmem:[#allocation2 + $0x88] sm:$0xff]  ;;  %v1342_v8 = vld [vmem:[#allocation2] sm:$0xff] }
  0x15   :  { %472 = vmatpush.bf16.msra.mxu1 %v1355_v9  ;;  %v158_v45 = vsel %vm1594_vm3, 0.0, %v154_v36  ;;  %v63_v47 = vadd.s32 32, %v1554_v7  ;;  %v61_v48 = vadd.s32 16, %v1554_v7  ;;  %v1620_v49 = vrot.slane %v86_v37, 7  ;;  %v1350_v9 = vld [vmem:[#allocation2 + $0x40] sm:$0xff] }
  0x16   :  { %501 = vmatpush.bf16.msra.mxu2 %v1363_v10  ;;  %v88_v50 = vunpack.c.h.bf16 %v1605_v38  ;;  %v124_v51 = vpack.c.bf16 %v116_v42, %v116_v42  ;;  %v125_v52 = vpack.c.bf16 %v114_v41, %v114_v41  ;;  %v103_v54 = vrot.slane %v87_v46, 7  ;;  %v1381_v38 = vld [vmem:[#allocation4 + $0x78] sm:$0xff] }
  0x17   :  { %v71_v53 = vand.u32 15, %v63_v47  ;;  %v165_v57 = vpack.c.bf16 %v155_v44, %v155_v44  ;;  %v166_v58 = vpack.c.bf16 %v158_v45, %v158_v45  ;;  %v62_v61 = vadd.s32 24, %v1554_v7 }
  0x18   :  { %444 = vmatpush.bf16.msra.mxu0 %v1346_v14  ;;  %1424 = vmatpush.bf16.msra.mxu3 %v1346_v14  ;;  %v104_v59 = vrot.slane %v88_v50, 7  ;;  %v111_v63 = vsel %vm107_vm0, %v1620_v49, %v103_v54  ;;  %v69_v0 = vand.u32 15, %v61_v48  ;;  %v181_v3 = vunpack.c.l.b16 %v124_v51 }
  0x19   :  { %473 = vmatpush.bf16.msra.mxu1 %v1354_v19  ;;  %vm1626_vm4 = vcmp.eq.s32.totalorder %v71_v53, 0  ;;  %v182_v4 = vunpack.c.l.b16 %v125_v52  ;;  %v229_v10 = vunpack.c.l.b16 %v165_v57  ;;  %v230_v11 = vunpack.c.l.b16 %v166_v58 }
  0x1a   :  { %502 = vmatpush.bf16.msra.mxu2 %v1362_v21  ;;  %v110_v1 = vsel %vm107_vm0, %v103_v54, %v104_v59  ;;  %v120_v2 = vsel %vm1626_vm4, 0.0, %v111_v63  ;;  %v89_v13 = vunpack.c.l.bf16 %v1562_v12  ;;  %v65_v14 = vadd.s32 48, %v1554_v7 }
  0x1b   :  { %v128_v5 = vpack.c.bf16 %v120_v2, %v120_v2  ;;  %v129_v6 = vpack.c.bf16 %v110_v1, %v110_v1  ;;  %v101_v16 = vrot.slane %v85_v20, 7  ;;  %v70_v19 = vand.u32 15, %v62_v61 }
  0x1c   :  { %445 = vmatpush.bf16.msra.mxu0 %v1345_v28  ;;  %1425 = vmatpush.bf16.msra.mxu3 %v1345_v28  ;;  %v143_v23 = vrot.slane %v86_v37, 1  ;;  %v144_v25 = vrot.slane %v87_v46, 1  ;;  %v73_v26 = vand.u32 15, %v65_v14  ;;  %v105_v28 = vrot.slane %v89_v13, 7 }
  0x1d   :  { %474 = vmatpush.bf16.msra.mxu1 %v1353_v29  ;;  %v185_v21 = vunpack.c.l.b16 %v128_v5  ;;  %v186_v22 = vunpack.c.l.b16 %v129_v6  ;;  %v189_v29 = vpack.c.b16 %v182_v4, %v181_v3  ;;  %v237_v33 = vpack.c.b16 %v230_v11, %v229_v10  ;;  %v1380_v6 = vld [vmem:[#allocation4 + $0x70] sm:$0xff] }
  0x1e   :  { %503 = vmatpush.bf16.msra.mxu2 %v1361_v31  ;;  %v1644_v31 = vld [vmem:[%s1947_s0] sm:$0xff]  ;;  %vm1646_vm5 = vcmp.eq.s32.totalorder %v69_v0, 0  ;;  %v113_v20 = vsel %vm107_vm0, %v1583_v30, %v101_v16  ;;  %vm1653_vm6 = vcmp.eq.s32.totalorder %v70_v19, 15  ;;  %vm1659_vm7 = vcmp.eq.s32.totalorder %v73_v26, 0  ;;  %v1687_v0 = vld [vmem:[%s1947_s0 + $0x8] sm:$0xff] }
  0x1f   :  { %v191_v36 = vpack.c.b16 %v186_v22, %v185_v21  ;;  %v109_v41 = vsel %vm107_vm0, %v104_v59, %v105_v28  ;;  %v112_v30 = vsel %vm107_vm0, %v101_v16, %v1620_v49  ;;  %v118_v42 = vsel %vm1646_vm5, 0.0, %v113_v20  ;;  %v1706_v16 = vld [vmem:[%s1947_s0 + $0x10] sm:$0xff]  ;;  %v1377_v20 = vld [vmem:[#allocation4 + $0x58] sm:$0xff] }
  0x20   :  { %446 = vmatpush.bf16.msra.mxu0 %v1344_v39  ;;  %1426 = vmatpush.bf16.msra.mxu3 %v1344_v39  ;;  %v152_v39 = vsel %vm148_vm1, %v143_v23, %v144_v25  ;;  %v108_v45 = vsel %vm107_vm0, %v105_v28, %v1575_v24  ;;  %v122_v46 = vsel %vm1659_vm7, 0.0, %v109_v41  ;;  %v126_v47 = vpack.c.bf16 %v118_v42, %v118_v42  ;;  %v1375_v41 = vld [vmem:[#allocation4 + $0x48] sm:$0xff]  ;;  %v1389_v42 = vld [vmem:[#allocation4 + $0xb8] sm:$0xff] }
  0x21   :  { %475 = vmatpush.bf16.msra.mxu1 %v1352_v40  ;;  %v160_v44 = vsel %vm1653_vm6, 0.0, %v152_v39  ;;  %v127_v48 = vpack.c.bf16 %v112_v30, %v112_v30  ;;  %v130_v52 = vpack.c.bf16 %v122_v46, %v122_v46  ;;  %v131_v53 = vpack.c.bf16 %v108_v45, %v108_v45  ;;  %v1376_v39 = vld [vmem:[#allocation4 + $0x50] sm:$0xff]  ;;  %v1374_v30 = vld [vmem:[#allocation4 + $0x40] sm:$0xff] }
  0x22   :  { %504 = vmatpush.bf16.msra.mxu2 %v1360_v43  ;;  %v153_v43 = vsel %vm148_vm1, %v1580_v27, %v143_v23  ;;  %v168_v51 = vpack.c.bf16 %v160_v44, %v160_v44  ;;  %v64_v54 = vadd.s32 40, %v1554_v7  ;;  %v145_v24 = vrot.slane %v88_v50, 1  ;;  %v1387_v44 = vld [vmem:[#allocation4 + $0xa8] sm:$0xff]  ;;  %v1729_v45 = vld [vmem:[%s1949_s2] ss:$0 sm:$0xff] }
  0x23   :  { %v167_v49 = vpack.c.bf16 %v153_v43, %v153_v43  ;;  %v184_v27 = vunpack.c.l.b16 %v127_v48  ;;  %v187_v58 = vunpack.c.l.b16 %v130_v52  ;;  %v188_v59 = vunpack.c.l.b16 %v131_v53  ;;  %v1388_v43 = vld [vmem:[#allocation4 + $0xb0] sm:$0xff]  ;;  %v1386_v48 = vld [vmem:[#allocation4 + $0xa0] sm:$0xff] }
  0x24   :  { %447 = vmatpush.bf16.msra.mxu0 %v1343_v55  ;;  %1427 = vmatpush.bf16.msra.mxu3 %v1343_v55  ;;  %v183_v55 = vunpack.c.l.b16 %v126_v47  ;;  %v232_v57 = vunpack.c.l.b16 %v168_v51  ;;  %v146_v61 = vrot.slane %v89_v13, 1  ;;  %v151_v50 = vsel %vm148_vm1, %v144_v25, %v145_v24  ;;  %v1385_v51 = vld [vmem:[#allocation4 + $0x98] sm:$0xff] }
  0x25   :  { %476 = vmatpush.bf16.msra.mxu1 %v1351_v56  ;;  %v231_v56 = vunpack.c.l.b16 %v167_v49  ;;  %v192_v2 = vpack.c.b16 %v188_v59, %v187_v58  ;;  %v66_v10 = vadd.s32 56, %v1554_v7  ;;  %v1373_v58 = vld [vmem:[#allocation4 + $0x38] sm:$0xff] }
  0x26   :  { %505 = vmatpush.bf16.msra.mxu2 %v1359_v60  ;;  %v72_v60 = vand.u32 15, %v64_v54  ;;  %v190_v63 = vpack.c.b16 %v184_v27, %v183_v55  ;;  %v150_v4 = vsel %vm148_vm1, %v145_v24, %v146_v61  ;;  %v1384_v27 = vld [vmem:[#allocation4 + $0x90] sm:$0xff]  ;;  %v1736_v59 = vld [vmem:[%s1952_s5 + $0x38] sm:$0xff] }
  0x27   :  { %v238_v1 = vpack.c.b16 %v232_v57, %v231_v56  ;;  %v74_v14 = vand.u32 15, %v66_v10  ;;  %v1371_v10 = vld [vmem:[#allocation4 + $0x28] sm:$0xff] }
  0x28   :  { %448 = vmatpush.bf16.msra.mxu0 %v1342_v8  ;;  %1428 = vmatpush.bf16.msra.mxu3 %v1342_v8  ;;  %vm1689_vm8 = vcmp.eq.s32.totalorder %v72_v60, 15  ;;  %v169_v8 = vpack.c.bf16 %v151_v50, %v151_v50  ;;  %v1383_v60 = vld [vmem:[#allocation4 + $0x88] sm:$0xff]  ;;  %v1382_v50 = vld [vmem:[#allocation4 + $0x80] sm:$0xff] }
  0x29   :  { %477 = vmatpush.bf16.msra.mxu1 %v1350_v9  ;;  %v162_v5 = vsel %vm1689_vm8, 0.0, %v150_v4  ;;  %vm1708_vm9 = vcmp.eq.s32.totalorder %v74_v14, 15 }
  0x2a   :  { %506 = vmatpush.bf16.msra.mxu2 %v1358_v15  ;;  %v170_v9 = vpack.c.bf16 %v162_v5, %v162_v5  ;;  %v233_v11 = vunpack.c.l.b16 %v169_v8  ;;  %v147_v15 = vrot.slane %v90_v17, 1 }
  0x2b   :  { %449 = vmatmul.bf16.vlgmr.msra.gmra.mxu0 %v189_v29  ;;  %459 = vmatmul.bf16.vlgmr.msra.gmra.mxu3 %v191_v36  ;;  %v1723_v29 = vld [vmem:[%s1947_s0 + $0x18] sm:$0xff]  ;;  %v1378_v36 = vld [vmem:[#allocation4 + $0x60] sm:$0xff] }
  0x2c   :  { %478 = vmatmul.bf16.vlgmr.msra.gmra.mxu1 %v1644_v31  ;;  %905 = vmatpush.bf16.msrb.mxu0 %v1381_v38  ;;  %v234_v13 = vunpack.c.l.b16 %v170_v9  ;;  %v156_v22 = vsel %vm148_vm1, %v147_v15, %v1592_v34  ;;  %v149_v12 = vsel %vm148_vm1, %v146_v61, %v147_v15  ;;  %v1379_v34 = vld [vmem:[#allocation4 + $0x68] sm:$0xff]  ;;  %v1372_v38 = vld [vmem:[#allocation4 + $0x30] sm:$0xff] }
  0x2d   :  { %507 = vmatmul.bf16.vlgmr.msra.gmra.mxu2 %v237_v33  ;;  %v164_v17 = vsel %vm1708_vm9, 0.0, %v156_v22  ;;  %v171_v23 = vpack.c.bf16 %v149_v12, %v149_v12  ;;  %1429 = vmatpush.bf16.msrb.mxu1 %v1389_v42 }
  0x2e   :  { %v239_v19 = vpack.c.b16 %v234_v13, %v233_v11  ;;  %v172_v25 = vpack.c.bf16 %v164_v17, %v164_v17  ;;  %876 = vmatpush.bf16.msrb.mxu3 %v1373_v58  ;;  %1031 = vmatpush.bf16.msrb.mxu2 %v1736_v59  ;;  %v1751_v11 = vld [vmem:[%s1952_s5 + $0x30] sm:$0xff]  ;;  %v1366_v58 = vld [vmem:[#allocation4] sm:$0xff] }
  0x2f   :  { %v235_v26 = vunpack.c.l.b16 %v171_v23  ;;  %v1370_v23 = vld [vmem:[#allocation4 + $0x20] sm:$0xff] }
  0x30   :  { %906 = vmatpush.bf16.msrb.mxu0 %v1380_v6  ;;  %v236_v28 = vunpack.c.l.b16 %v172_v25  ;;  %v1757_v25 = vld [vmem:[%s1952_s5 + $0x28] sm:$0xff] }
  0x31   :  { %1430 = vmatpush.bf16.msrb.mxu1 %v1388_v43 }
  0x32   :  { %v240_v33 = vpack.c.b16 %v236_v28, %v235_v26  ;;  %877 = vmatpush.bf16.msrb.mxu3 %v1372_v38  ;;  %1032 = vmatpush.bf16.msrb.mxu2 %v1751_v11 }
  0x34   :  { %907 = vmatpush.bf16.msrb.mxu0 %v1379_v34  ;;  %v1369_v34 = vld [vmem:[#allocation4 + $0x18] sm:$0xff] }
  0x35   :  { %1431 = vmatpush.bf16.msrb.mxu1 %v1387_v44 }
  0x36   :  { %878 = vmatpush.bf16.msrb.mxu3 %v1371_v10  ;;  %1033 = vmatpush.bf16.msrb.mxu2 %v1757_v25 }
  0x38   :  { %908 = vmatpush.bf16.msrb.mxu0 %v1378_v36  ;;  %v1764_v36 = vld [vmem:[%s1952_s5 + $0x20] sm:$0xff] }
  0x39   :  { %1432 = vmatpush.bf16.msrb.mxu1 %v1386_v48 }
  0x3a   :  { %879 = vmatpush.bf16.msrb.mxu3 %v1370_v23  ;;  %1034 = vmatpush.bf16.msrb.mxu2 %v1764_v36 }
  0x3b   :  { %454 = vmatmul.bf16.gmra.mxu0 %v190_v63  ;;  %464 = vmatmul.bf16.gmra.mxu3 %v192_v2 }
  0x3c   :  { %483 = vmatmul.bf16.gmra.mxu1 %v1687_v0  ;;  %909 = vmatpush.bf16.msrb.mxu0 %v1377_v20 }
  0x3d   :  { %512 = vmatmul.bf16.gmra.mxu2 %v238_v1  ;;  %1433 = vmatpush.bf16.msrb.mxu1 %v1385_v51 }
  0x3e   :  { %880 = vmatpush.bf16.msrb.mxu3 %v1369_v34 }
  0x40   :  { %910 = vmatpush.bf16.msrb.mxu0 %v1376_v39 }
  0x41   :  { %1434 = vmatpush.bf16.msrb.mxu1 %v1384_v27 }
  0x44   :  { %911 = vmatpush.bf16.msrb.mxu0 %v1375_v41 }
  0x45   :  { %1435 = vmatpush.bf16.msrb.mxu1 %v1383_v60 }
  0x48   :  { %912 = vmatpush.bf16.msrb.mxu0 %v1374_v30 }
  0x49   :  { %1436 = vmatpush.bf16.msrb.mxu1 %v1382_v50 }
  0x4c   :  { %488 = vmatmul.bf16.gmra.mxu1 %v1706_v16  ;;  %934 = vmatpush.bf16.msra.mxu0 %v1389_v42 }
  0x4d   :  { %517 = vmatmul.bf16.gmra.mxu2 %v239_v19 }
  0x50   :  { %935 = vmatpush.bf16.msra.mxu0 %v1388_v43 }
  0x54   :  { %936 = vmatpush.bf16.msra.mxu0 %v1387_v44  ;;  %v1368_v44 = vld [vmem:[#allocation4 + $0x10] sm:$0xff] }
  0x55   :  { %881 = vmatpush.bf16.msrb.mxu3 %v1368_v44 }
  0x58   :  { %937 = vmatpush.bf16.msra.mxu0 %v1386_v48 }
  0x5c   :  { %493 = vmatmul.bf16.gmra.mxu1 %v1723_v29  ;;  %938 = vmatpush.bf16.msra.mxu0 %v1385_v51 }
  0x5d   :  { %522 = vmatmul.bf16.gmra.mxu2 %v240_v33 }
  0x60   :  { %939 = vmatpush.bf16.msra.mxu0 %v1384_v27 }
  0x64   :  { %940 = vmatpush.bf16.msra.mxu0 %v1383_v60 }
  0x68   :  { %941 = vmatpush.bf16.msra.mxu0 %v1382_v50 }
  0xa8   :  { %v450_v46 = vpop.f32.mrf.mxu0 }
  0xa9   :  { %v479_v47 = vpop.f32.mrf.mxu1  ;;  %v451_v49 = vadd.f32 %v1729_v45, %v450_v46  ;;  %v1773_v46 = vld [vmem:[%s1952_s5 + $0x18] sm:$0xff] }
  0xaa   :  { %1035 = vmatpush.bf16.msrb.mxu2 %v1773_v46 }
  0xab   :  { %v480_v52 = vadd.f32 %v479_v47, %v451_v49 }
  0xae   :  { %v460_v33 = vpop.f32.mrf.mxu3 }
  0xaf   :  { %v461_v30 = vadd.f32 %v1729_v45, %v460_v33 }
  0xb0   :  { %v508_v53 = vpop.f32.mrf.mxu2  ;;  %v452_v54 = vpop.f32.mrf.mxu0 }
  0xb1   :  { %v481_v55 = vpop.f32.mrf.mxu1  ;;  %v509_v56 = vadd.f32 %v508_v53, %v480_v52  ;;  %v453_v57 = vadd.f32 %v1729_v45, %v452_v54  ;;  %v1367_v52 = vld [vmem:[#allocation4 + $0x8] sm:$0xff]  ;;  %v1785_v54 = vld [vmem:[%s1952_s5 + $0x10] sm:$0xff] }
  0xb2   :  { %882 = vmatpush.bf16.msrb.mxu3 %v1367_v52  ;;  %1036 = vmatpush.bf16.msrb.mxu2 %v1785_v54 }
  0xb3   :  { %v1738_v24 = vmax.f32 %v509_v56, 0.0  ;;  %v482_v61 = vadd.f32 %v481_v55, %v453_v57 }
  0xb5   :  { %v536_v5 = vpack.c.bf16 %v1738_v24, %v1738_v24 }
  0xb6   :  { %v462_v53 = vpop.f32.mrf.mxu3  ;;  %883 = vmatpush.bf16.msrb.mxu3 %v1366_v58 }
  0xb7   :  { %v640_v14 = vunpack.c.l.b16 %v536_v5  ;;  %v463_v50 = vadd.f32 %v1729_v45, %v462_v53 }
  0xb8   :  { %v510_v63 = vpop.f32.mrf.mxu2  ;;  %v455_v2 = vpop.f32.mrf.mxu0 }
  0xb9   :  { %v511_v1 = vadd.f32 %v510_v63, %v482_v61  ;;  %v484_v4 = vpop.f32.mrf.mxu1  ;;  %v456_v8 = vadd.f32 %v1729_v45, %v455_v2  ;;  %v1793_v2 = vld [vmem:[%s1952_s5 + $0x8] sm:$0xff] }
  0xba   :  { %1037 = vmatpush.bf16.msrb.mxu2 %v1793_v2  ;;  %1437 = vmatpush.bf16.msra.mxu3 %v1736_v59 }
  0xbb   :  { %v1743_v6 = vmax.f32 %v511_v1, 0.0  ;;  %v485_v13 = vadd.f32 %v484_v4, %v456_v8  ;;  %v1808_v8 = vld [vmem:[%s1952_s5] sm:$0xff] }
  0xbd   :  { %v537_v9 = vpack.c.bf16 %v1743_v6, %v1743_v6  ;;  %v545_v53 = vrot.slane %v1743_v6, 7 }
  0xbe   :  { %1038 = vmatpush.bf16.msrb.mxu2 %v1808_v8  ;;  %1438 = vmatpush.bf16.msra.mxu3 %v1751_v11 }
  0xbf   :  { %v641_v15 = vunpack.c.l.b16 %v537_v9 }
  0xc0   :  { %v513_v19 = vpop.f32.mrf.mxu2  ;;  %v457_v22 = vpop.f32.mrf.mxu0 }
  0xc1   :  { %v486_v12 = vpop.f32.mrf.mxu1  ;;  %v648_v17 = vpack.c.b16 %v641_v15, %v640_v14  ;;  %v514_v26 = vadd.f32 %v513_v19, %v485_v13  ;;  %v458_v28 = vadd.f32 %v1729_v45, %v457_v22  ;;  %v465_v14 = vpop.f32.mrf.mxu3  ;;  %1039 = vmatmul.bf16.vlgmr.msrb.gmra.mxu2 %v1644_v31 }
  0xc2   :  { %v466_v22 = vadd.f32 %v1729_v45, %v465_v14  ;;  %1439 = vmatpush.bf16.msra.mxu3 %v1757_v25 }
  0xc3   :  { %913 = vmatmul.bf16.vlgmr.msrb.gmra.mxu0 %v648_v17  ;;  %v1766_v20 = vmax.f32 %v514_v26, 0.0  ;;  %v487_v39 = vadd.f32 %v486_v12, %v458_v28 }
  0xc5   :  { %v538_v48 = vpack.c.bf16 %v1766_v20, %v1766_v20  ;;  %v578_v1 = vrot.slane %v1766_v20, 1 }
  0xc6   :  { %1440 = vmatpush.bf16.msra.mxu3 %v1764_v36 }
  0xc7   :  { %v642_v55 = vunpack.c.l.b16 %v538_v48 }
  0xc8   :  { %v515_v41 = vpop.f32.mrf.mxu2 }
  0xc9   :  { %v516_v42 = vadd.f32 %v515_v41, %v487_v39  ;;  %v489_v43 = vpop.f32.mrf.mxu1  ;;  %v467_v48 = vpop.f32.mrf.mxu3 }
  0xca   :  { %v490_v49 = vadd.f32 %v489_v43, %v461_v30  ;;  %v468_v25 = vadd.f32 %v1729_v45, %v467_v48  ;;  %1441 = vmatpush.bf16.msra.mxu3 %v1773_v46 }
  0xcb   :  { %v1775_v47 = vmax.f32 %v516_v42, 0.0 }
  0xcd   :  { %v539_v51 = vpack.c.bf16 %v1775_v47, %v1775_v47  ;;  %v579_v56 = vrot.slane %v1775_v47, 1 }
  0xce   :  { %1442 = vmatpush.bf16.msra.mxu3 %v1785_v54 }
  0xcf   :  { %v643_v27 = vunpack.c.l.b16 %v539_v51  ;;  %v588_v38 = vsel %vm148_vm1, %v578_v1, %v579_v56 }
  0xd0   :  { %v518_v57 = vpop.f32.mrf.mxu2  ;;  %v602_v13 = vpack.c.bf16 %v588_v38, %v588_v38 }
  0xd1   :  { %v519_v60 = vadd.f32 %v518_v57, %v490_v49  ;;  %v491_v61 = vpop.f32.mrf.mxu1  ;;  %v649_v63 = vpack.c.b16 %v643_v27, %v642_v55  ;;  %1044 = vmatmul.bf16.gmra.mxu2 %v1687_v0 }
  0xd2   :  { %v492_v9 = vadd.f32 %v491_v61, %v463_v50  ;;  %v666_v26 = vunpack.c.l.b16 %v602_v13  ;;  %1443 = vmatpush.bf16.msra.mxu3 %v1793_v2 }
  0xd3   :  { %v1795_v4 = vmax.f32 %v519_v60, 0.0  ;;  %918 = vmatmul.bf16.gmra.mxu0 %v649_v63 }
  0xd5   :  { %v580_v5 = vrot.slane %v1795_v4, 1  ;;  %v540_v33 = vpack.c.bf16 %v1795_v4, %v1795_v4 }
  0xd6   :  { %1444 = vmatpush.bf16.msra.mxu3 %v1808_v8  ;;  %v547_v8 = vrot.slane %v1775_v47, 7 }
  0xd7   :  { %v587_v10 = vsel %vm148_vm1, %v579_v56, %v580_v5  ;;  %v644_v41 = vunpack.c.l.b16 %v540_v33  ;;  %v544_v56 = vrot.slane %v1738_v24, 7 }
  0xd8   :  { %v520_v15 = vpop.f32.mrf.mxu2  ;;  %v595_v19 = vsel %vm1653_vm6, 0.0, %v587_v10 }
  0xd9   :  { %v521_v59 = vadd.f32 %v520_v15, %v492_v9  ;;  %v603_v12 = vpack.c.bf16 %v595_v19, %v595_v19  ;;  %v494_v17 = vpop.f32.mrf.mxu1  ;;  %v558_v45 = vsel %vm107_vm0, %v544_v56, %v545_v53 }
  0xda   :  { %v495_v37 = vadd.f32 %v494_v17, %v466_v22  ;;  %v569_v13 = vpack.c.bf16 %v558_v45, %v558_v45  ;;  %v577_v22 = vrot.slane %v1743_v6, 1  ;;  %v546_v6 = vrot.slane %v1766_v20, 7 }
  0xdb   :  { %v1817_v23 = vmax.f32 %v521_v59, 0.0  ;;  %v667_v28 = vunpack.c.l.b16 %v603_v12 }
  0xdc   :  { %v556_v20 = vsel %vm107_vm0, %v546_v6, %v547_v8 }
  0xdd   :  { %v673_v34 = vpack.c.b16 %v667_v28, %v666_v26  ;;  %v541_v39 = vpack.c.bf16 %v1817_v23, %v1817_v23  ;;  %v581_v30 = vrot.slane %v1817_v23, 1  ;;  %v589_v26 = vsel %vm148_vm1, %v577_v22, %v578_v1 }
  0xde   :  { %v617_v28 = vunpack.c.l.b16 %v569_v13 }
  0xdf   :  { %947 = vmatmul.bf16.vlgmr.msrb.gmra.mxu1 %v673_v34  ;;  %v645_v11 = vunpack.c.l.b16 %v541_v39  ;;  %v586_v51 = vsel %vm148_vm1, %v580_v5, %v581_v30  ;;  %v576_v5 = vrot.slane %v1738_v24, 1  ;;  %v593_v39 = vsel %vm1594_vm3, 0.0, %v589_v26 }
  0xe0   :  { %v523_v42 = vpop.f32.mrf.mxu2  ;;  %v604_v27 = vpack.c.bf16 %v586_v51, %v586_v51  ;;  %v601_v1 = vpack.c.bf16 %v593_v39, %v593_v39 }
  0xe1   :  { %v524_v43 = vadd.f32 %v523_v42, %v495_v37  ;;  %v650_v44 = vpack.c.b16 %v645_v11, %v644_v41  ;;  %v496_v31 = vpop.f32.mrf.mxu1  ;;  %v590_v21 = vsel %vm148_vm1, %v576_v5, %v577_v22  ;;  %1049 = vmatmul.bf16.gmra.mxu2 %v1706_v16  ;;  %v1916_v22 = vld [vmem:[%s1953_s6] ss:$0 sm:$0xff] }
  0xe2   :  { %v497_v55 = vadd.f32 %v496_v31, %v468_v25  ;;  %v668_v63 = vunpack.c.l.b16 %v604_v27  ;;  %v600_v42 = vpack.c.bf16 %v590_v21, %v590_v21 }
  0xe3   :  { %v1827_v49 = vmax.f32 %v524_v43, 0.0  ;;  %923 = vmatmul.bf16.gmra.mxu0 %v650_v44  ;;  %v665_v43 = vunpack.c.l.b16 %v601_v1  ;;  %v571_v44 = vpack.c.bf16 %v556_v20, %v556_v20 }
  0xe4   :  { %v664_v48 = vunpack.c.l.b16 %v600_v42 }
  0xe5   :  { %v582_v52 = vrot.slane %v1827_v49, 1  ;;  %v542_v50 = vpack.c.bf16 %v1827_v49, %v1827_v49  ;;  %v619_v25 = vunpack.c.l.b16 %v571_v44 }
  0xe6   :  { %v672_v51 = vpack.c.b16 %v665_v43, %v664_v48 }
  0xe7   :  { %v585_v36 = vsel %vm148_vm1, %v581_v30, %v582_v52  ;;  %v646_v14 = vunpack.c.l.b16 %v542_v50  ;;  %v557_v30 = vsel %vm107_vm0, %v545_v53, %v546_v6  ;;  %v548_v53 = vrot.slane %v1795_v4, 7 }
  0xe8   :  { %v525_v57 = vpop.f32.mrf.mxu2  ;;  %v597_v58 = vsel %vm1689_vm8, 0.0, %v585_v36  ;;  %v562_v35 = vsel %vm1646_vm5, 0.0, %v557_v30  ;;  %v549_v36 = vrot.slane %v1817_v23, 7 }
  0xe9   :  { %v526_v60 = vadd.f32 %v525_v57, %v497_v55  ;;  %v605_v61 = vpack.c.bf16 %v597_v58, %v597_v58  ;;  %v570_v31 = vpack.c.bf16 %v562_v35, %v562_v35  ;;  %v555_v18 = vsel %vm107_vm0, %v547_v8, %v548_v53 }
  0xea   :  { %v554_v16 = vsel %vm107_vm0, %v548_v53, %v549_v36  ;;  %v564_v27 = vsel %vm1626_vm4, 0.0, %v555_v18 }
  0xeb   :  { %v1843_v46 = vmax.f32 %v526_v60, 0.0  ;;  %v669_v38 = vunpack.c.l.b16 %v605_v61  ;;  %v572_v57 = vpack.c.bf16 %v564_v27, %v564_v27  ;;  %v550_v61 = vrot.slane %v1827_v49, 7 }
  0xed   :  { %v551_v3 = vrot.slane %v1843_v46, 7  ;;  %v583_v9 = vrot.slane %v1843_v46, 1  ;;  %v674_v10 = vpack.c.b16 %v669_v38, %v668_v63  ;;  %v543_v54 = vpack.c.bf16 %v1843_v46, %v1843_v46 }
  0xee   :  { %v620_v60 = vunpack.c.l.b16 %v572_v57  ;;  %v553_v23 = vsel %vm107_vm0, %v549_v36, %v550_v61 }
  0xef   :  { %952 = vmatmul.bf16.gmra.mxu1 %v674_v10  ;;  %v647_v15 = vunpack.c.l.b16 %v543_v54  ;;  %v559_v0 = vsel %vm107_vm0, %v551_v3, %v544_v56  ;;  %v591_v24 = vsel %vm148_vm1, %v583_v9, %v576_v5  ;;  %v584_v2 = vsel %vm148_vm1, %v582_v52, %v583_v9 }
  0xf0   :  { %v560_v19 = vsel %vm1585_vm2, 0.0, %v559_v0  ;;  %v599_v17 = vsel %vm1708_vm9, 0.0, %v591_v24  ;;  %v606_v37 = vpack.c.bf16 %v584_v2, %v584_v2  ;;  %v618_v52 = vunpack.c.l.b16 %v570_v31  ;;  %v1910_v24 = vld [vmem:[%s1951_s4] ss:$0 sm:$0xff] }
  0xf1   :  { %v651_v59 = vpack.c.b16 %v647_v15, %v646_v14  ;;  %v568_v12 = vpack.c.bf16 %v560_v19, %v560_v19  ;;  %v607_v34 = vpack.c.bf16 %v599_v17, %v599_v17  ;;  %v573_v56 = vpack.c.bf16 %v554_v16, %v554_v16 }
  0xf2   :  { %v670_v41 = vunpack.c.l.b16 %v606_v37  ;;  %v625_v55 = vpack.c.b16 %v619_v25, %v618_v52  ;;  %v552_v45 = vsel %vm107_vm0, %v550_v61, %v551_v3  ;;  %v566_v62 = vsel %vm1659_vm7, 0.0, %v553_v23 }
  0xf3   :  { %928 = vmatmul.bf16.gmra.mxu0 %v651_v59  ;;  %v616_v32 = vunpack.c.l.b16 %v568_v12  ;;  %v671_v11 = vunpack.c.l.b16 %v607_v34  ;;  %v621_v58 = vunpack.c.l.b16 %v573_v56  ;;  %v575_v63 = vpack.c.bf16 %v552_v45, %v552_v45 }
  0xf4   :  { %v574_v38 = vpack.c.bf16 %v566_v62, %v566_v62 }
  0xf5   :  { %v624_v33 = vpack.c.b16 %v617_v28, %v616_v32  ;;  %v675_v47 = vpack.c.b16 %v671_v11, %v670_v41  ;;  %v626_v4 = vpack.c.b16 %v621_v58, %v620_v60  ;;  %v623_v50 = vunpack.c.l.b16 %v575_v63 }
  0xf6   :  { %v622_v5 = vunpack.c.l.b16 %v574_v38 }
  0xf7   :  { %884 = vmatmul.bf16.vlgmr.msrb.gmra.mxu3 %v624_v33 }
  0xf8   :  { %v627_v9 = vpack.c.b16 %v623_v50, %v622_v5 }
  0xff   :  { %957 = vmatmul.bf16.gmra.mxu1 %v675_v47 }
 0x103   :  { %942 = vmatmul.bf16.vlgmr.msra.gmra.mxu0 %v672_v51 }
 0x107   :  { %889 = vmatmul.bf16.gmra.mxu3 %v625_v55 }
 0x117   :  { %894 = vmatmul.bf16.gmra.mxu3 %v626_v4 }
 0x127   :  { %899 = vmatmul.bf16.gmra.mxu3 %v627_v9 }
 0x137   :  { %1054 = vmatmul.bf16.vlgmr.msra.gmra.mxu3 %v1723_v29 }
 0x140   :  { %v914_v49 = vpop.f32.mrf.mxu0 }
 0x144   :  { %v1040_v7 = vpop.f32.mrf.mxu2 }
 0x145   :  { %v1041_v26 = vadd.f32 %v1916_v22, %v1040_v7 }
 0x148   :  { %v916_v10 = vpop.f32.mrf.mxu0 }
 0x14c   :  { %v1042_v0 = vpop.f32.mrf.mxu2 }
 0x14d   :  { %v1043_v28 = vadd.f32 %v1916_v22, %v1042_v0 }
 0x150   :  { %v919_v54 = vpop.f32.mrf.mxu0 }
 0x154   :  { %v1045_v17 = vpop.f32.mrf.mxu2 }
 0x155   :  { %v1046_v44 = vadd.f32 %v1916_v22, %v1045_v17 }
 0x158   :  { %v921_v13 = vpop.f32.mrf.mxu0 }
 0x15c   :  { %v948_v33 = vpop.f32.mrf.mxu1  ;;  %v1047_v30 = vpop.f32.mrf.mxu2 }
 0x15d   :  { %v1048_v51 = vadd.f32 %v1916_v22, %v1047_v30 }
 0x160   :  { %v924_v14 = vpop.f32.mrf.mxu0 }
 0x164   :  { %v950_v35 = vpop.f32.mrf.mxu1  ;;  %v1050_v53 = vpop.f32.mrf.mxu2 }
 0x165   :  { %v1051_v23 = vadd.f32 %v1916_v22, %v1050_v53 }
 0x168   :  { %v926_v46 = vpop.f32.mrf.mxu0 }
 0x16c   :  { %v953_v56 = vpop.f32.mrf.mxu1  ;;  %v1052_v61 = vpop.f32.mrf.mxu2 }
 0x16d   :  { %v1053_v63 = vadd.f32 %v1916_v22, %v1052_v61 }
 0x170   :  { %v1903_v15 = vpop.f32.mrf.mxu0 }
 0x174   :  { %v955_v38 = vpop.f32.mrf.mxu1 }
 0x178   :  { %v1905_v3 = vpop.f32.mrf.mxu0 }
 0x17a   :  { %v885_v40 = vpop.f32.mrf.mxu3 }
 0x17b   :  { %v886_v29 = vadd.f32 %v1910_v24, %v885_v40 }
 0x17c   :  { %v958_v7 = vpop.f32.mrf.mxu1 }
 0x17d   :  { %v915_v12 = vadd.f32 %v914_v49, %v886_v29 }
 0x180   :  { %v943_v19 = vpop.f32.mrf.mxu0 }
 0x181   :  { %v944_v32 = vadd.f32 %v943_v19, %v915_v12 }
 0x182   :  { %v887_v59 = vpop.f32.mrf.mxu3 }
 0x183   :  { %v888_v2 = vadd.f32 %v1910_v24, %v887_v59  ;;  %v1060_v34 = vadd.f32 %v1041_v26, %v944_v32 }
 0x185   :  { %v917_v6 = vadd.f32 %v916_v10, %v888_v2  ;;  %v1068_v11 = vmax.f32 %v1060_v34, 0.0  ;;  %v960_v2 = vpop.f32.mrf.mxu1 }
 0x188   :  { %v945_v37 = vpop.f32.mrf.mxu0 }
 0x189   :  { %v946_v8 = vadd.f32 %v945_v37, %v917_v6 }
 0x18a   :  { %v890_v39 = vpop.f32.mrf.mxu3 }
 0x18b   :  { %v1061_v21 = vadd.f32 %v1043_v28, %v946_v8  ;;  %v891_v41 = vadd.f32 %v1910_v24, %v890_v39 }
 0x18d   :  { %v1069_v1 = vmax.f32 %v1061_v21, 0.0  ;;  %v920_v42 = vadd.f32 %v919_v54, %v891_v41 }
 0x18f   :  { %v1401_v20 = vpack.c.bf16 %v1069_v1, %v1068_v11  ;;  %v949_v43 = vadd.f32 %v948_v33, %v920_v42 }
 0x191   :  { %1402 = vst [vmem:[%s1954_s7] sm:$0xff] %v1401_v20   ;;  %v1062_v25 = vadd.f32 %v1046_v44, %v949_v43 }
 0x192   :  { %v892_v47 = vpop.f32.mrf.mxu3 }
 0x193   :  { %v893_v48 = vadd.f32 %v1910_v24, %v892_v47  ;;  %v1070_v18 = vmax.f32 %v1062_v25, 0.0 }
 0x195   :  { %v922_v31 = vadd.f32 %v921_v13, %v893_v48 }
 0x197   :  { %v951_v52 = vadd.f32 %v950_v35, %v922_v31 }
 0x199   :  { %v1063_v55 = vadd.f32 %v1048_v51, %v951_v52 }
 0x19a   :  { %v895_v36 = vpop.f32.mrf.mxu3 }
 0x19b   :  { %v1071_v16 = vmax.f32 %v1063_v55, 0.0  ;;  %v896_v27 = vadd.f32 %v1910_v24, %v895_v36 }
 0x19d   :  { %v1406_v57 = vpack.c.bf16 %v1071_v16, %v1070_v18  ;;  %v925_v58 = vadd.f32 %v924_v14, %v896_v27 }
 0x19f   :  { %1418 = vst [vmem:[%s1954_s7 + $0x8] sm:$0xff] %v1406_v57   ;;  %v954_v4 = vadd.f32 %v953_v56, %v925_v58 }
 0x1a1   :  { %v1064_v50 = vadd.f32 %v1051_v23, %v954_v4 }
 0x1a2   :  { %v897_v60 = vpop.f32.mrf.mxu3 }
 0x1a3   :  { %v898_v45 = vadd.f32 %v1910_v24, %v897_v60  ;;  %v1072_v10 = vmax.f32 %v1064_v50, 0.0 }
 0x1a5   :  { %v927_v62 = vadd.f32 %v926_v46, %v898_v45 }
 0x1a7   :  { %v956_v5 = vadd.f32 %v955_v38, %v927_v62 }
 0x1a9   :  { %v1065_v9 = vadd.f32 %v1053_v63, %v956_v5 }
 0x1aa   :  { %v900_v49 = vpop.f32.mrf.mxu3 }
 0x1ab   :  { %v1073_v54 = vmax.f32 %v1065_v9, 0.0  ;;  %v901_v40 = vadd.f32 %v1910_v24, %v900_v49 }
 0x1ad   :  { %v1411_v13 = vpack.c.bf16 %v1073_v54, %v1072_v10  ;;  %v930_v29 = vadd.f32 %v1903_v15, %v901_v40 }
 0x1af   :  { %1419 = vst [vmem:[%s1954_s7 + $0x10] sm:$0xff] %v1411_v13   ;;  %v959_v12 = vadd.f32 %v958_v7, %v930_v29 }
 0x1b2   :  { %v902_v14 = vpop.f32.mrf.mxu3 }
 0x1b3   :  { %v903_v46 = vadd.f32 %v1910_v24, %v902_v14 }
 0x1b5   :  { %v932_v19 = vadd.f32 %v1905_v3, %v903_v46 }
 0x1b7   :  { %v961_v32 = vadd.f32 %v960_v2, %v932_v19 }
 0x1ba   :  { %v1055_v0 = vpop.f32.mrf.mxu3 }
 0x1bb   :  { %v1056_v59 = vadd.f32 %v1916_v22, %v1055_v0 }
 0x1bd   :  { %v1066_v26 = vadd.f32 %v1056_v59, %v959_v12 }
 0x1bf   :  { %v1074_v33 = vmax.f32 %v1066_v26, 0.0 }
 0x1c2   :  { %v1057_v17 = vpop.f32.mrf.mxu3 }
 0x1c3   :  { %v1058_v28 = vadd.f32 %v1916_v22, %v1057_v17 }
 0x1c5   :  { %v1067_v6 = vadd.f32 %v1058_v28, %v961_v32 }
 0x1c7   :  { %v1075_v37 = vmax.f32 %v1067_v6, 0.0 }
 0x1c9   :  { %v1416_v34 = vpack.c.bf16 %v1075_v37, %v1074_v33 }
 0x1cb   :  { %1420 = vst [vmem:[%s1954_s7 + $0x18] sm:$0xff] %v1416_v34  }
 0x1cc   :  { %1096 = vsyncpa [#allocation3], 1 }
 0x1cd   :  { %1097 = vsyncpa [#allocation5], 1 }

</bundles_post_ra>
